<compile_context>
chip_gen: v7x
topology: tpu7x:2x2x1
jax: 0.10.0
libtpu: 0.0.40
codegen_flags: <defaults>
</compile_context>

<pallas_src>
import functools

import jax
import jax.numpy as jnp
from jax import lax
from jax.experimental import pallas as pl
from jax.experimental.pallas import tpu as pltpu


# Contract both operands on their last dim: q @ k.T without an explicit transpose.
_TRANS_B_DIMS = (((1,), (1,)), ((), ()))


def _contrastive_kernel(return_scores, score_cols,
                        temp_ref, v_ref, a_ref,
                        w1_ref, b1_ref, w2_ref, b2_ref,
                        *out_refs):
    scal_ref = out_refs[0]
    b = v_ref.shape[0]

    # --- merged projection heads: one layer-1 matmul, one block-diagonal layer-2 matmul ---
    # x = [video; audio] (2B, D); w1 = [vw1 | aw1] (D, 2H); w2 = blockdiag(vw2, aw2) (2H, 2P).
    x = jnp.concatenate([v_ref[...], a_ref[...]], axis=0).astype(jnp.bfloat16)
    h = jnp.maximum(
        jnp.dot(x, w1_ref[...], preferred_element_type=jnp.float32) + b1_ref[...], 0.0)
    p2 = jnp.dot(h.astype(jnp.bfloat16), w2_ref[...],
                 preferred_element_type=jnp.float32) + b2_ref[...]
    pdim = p2.shape[-1] // 2
    pv = p2[:b, :pdim]          # video rows use the first block column
    pa = p2[b:, pdim:]          # audio rows use the second block column

    # --- L2 normalize (matches F.normalize eps=1e-12): x * rsqrt(max(sum x^2, eps^2)) ---
    eps2 = jnp.float32(1e-24)
    pv = pv * lax.rsqrt(jnp.maximum(jnp.sum(pv * pv, axis=-1, keepdims=True), eps2))
    pa = pa * lax.rsqrt(jnp.maximum(jnp.sum(pa * pa, axis=-1, keepdims=True), eps2))

    # Fold 1/T into the query side (one B*P multiply instead of a B^2 multiply).
    inv_t = 1.0 / temp_ref[0, 0]
    pvs = pv * inv_t

    # Positive scores (diagonal) via a per-row dot: no eye mask, no B^2 select.
    diag = jnp.sum(pvs * pa, axis=-1, keepdims=True)              # (B, 1) == s_ii

    # --- similarity scores: single f32 (B, B) matrix (A2V is its transpose, never built) ---
    keys = pa
    if return_scores and score_cols > b:
        # Lane-dense padded output: pad keys along the batch (sublane) dim with zeros so the
        # score matmul directly yields a (B, score_cols) lane-dense block (extra cols are 0).
        keys = jnp.concatenate(
            [pa, jnp.zeros((score_cols - b, pdim), jnp.float32)], axis=0)
    s_full = lax.dot_general(pvs, keys, _TRANS_B_DIMS,
                             preferred_element_type=jnp.float32)
    s = s_full[:, :b] if s_full.shape[-1] != b else s_full

    # --- fused CE: row-wise LSE (V2A) and column-wise LSE (A2V) sharing one exp pass ---
    row_m = jnp.max(s, axis=-1, keepdims=True)                    # (B, 1)
    p = jnp.exp(s - row_m)                                        # only full-matrix exp
    row_lse = jnp.log(jnp.sum(p, axis=-1, keepdims=True)) + row_m

    g = jnp.max(row_m)                                            # global max (scalar)
    c = jnp.exp(row_m - g)                                        # (B, 1) correction, B exps
    # sum_i p_ij * c_i = sum_i exp(s_ij - g)  ->  col_lse_j = log(.) + g
    col_lse = jnp.log(jnp.sum(p * c, axis=0, keepdims=True)) + g  # (1, B)

    mean_diag = jnp.mean(diag)
    loss_v2a = jnp.mean(row_lse) - mean_diag
    loss_a2v = jnp.mean(col_lse) - mean_diag
    total = 0.5 * (loss_v2a + loss_a2v)

    # Pos/Neg score metrics (identical for V2A and A2V since s_a2v = s.T).
    # TODO(synk): metrics are computed on temperature-scaled scores (the CE logits); if the
    # original InfoNCELoss returned raw cosine similarities, these differ by a 1/T factor.
    pos_mean = mean_diag
    neg_mean = (jnp.sum(s) - jnp.sum(diag)) * jnp.float32(1.0 / (b * b - b))

    # --- outputs: all scalars packed into one lane-dense (1, 128) store ---
    lane = lax.broadcasted_iota(jnp.int32, (1, 128), 1)
    packed = jnp.where(lane == 0, total,
             jnp.where(lane == 1, loss_v2a,
             jnp.where(lane == 2, loss_a2v,
             jnp.where(lane == 3, pos_mean,
             jnp.where(lane == 4, neg_mean, jnp.float32(0.0))))))
    scal_ref[...] = packed.astype(jnp.float32)

    if return_scores:
        out_refs[1][...] = s_full


def contrastive_loss_forward(video_emb, audio_emb, params, *, temperature=0.07,
                             return_scores=False):
    B, D = video_emb.shape
    vw1, vb1, vw2, vb2 = params["video"]
    aw1, ab1, aw2, ab2 = params["audio"]
    H = vw1.shape[1]
    P = vw2.shape[1]

    # Pack the two heads into block-merged weights (bf16). Layer 1 is a column concat (the
    # off-diagonal products are computed on spare MXU capacity and ignored); layer 2 must be
    # block-diagonal so the ignored blocks never contaminate the used ones.
    w1 = jnp.concatenate([vw1, aw1], axis=1).astype(jnp.bfloat16)           # (D, 2H)
    b1 = jnp.concatenate([vb1, ab1], axis=1).astype(jnp.float32)            # (1, 2H)
    w2 = jnp.zeros((2 * H, 2 * P), jnp.bfloat16)
    w2 = w2.at[:H, :P].set(vw2.astype(jnp.bfloat16))
    w2 = w2.at[H:, P:].set(aw2.astype(jnp.bfloat16))                        # (2H, 2P)
    b2 = jnp.concatenate([vb2, ab2], axis=1).astype(jnp.float32)            # (1, 2P)

    # Temperature as a runtime SMEM scalar: learnable/swept T does not force a recompile.
    temp = jnp.full((1, 1), temperature, jnp.float32)

    score_cols = max(128, ((B + 127) // 128) * 128) if return_scores else B

    vmem = lambda: pl.BlockSpec(memory_space=pltpu.MemorySpace.VMEM)
    smem = lambda: pl.BlockSpec(memory_space=pltpu.MemorySpace.SMEM)

    if return_scores:
        out_shape = (jax.ShapeDtypeStruct((1, 128), jnp.float32),
                     jax.ShapeDtypeStruct((B, score_cols), jnp.float32))
        out_specs = (vmem(), vmem())
    else:
        out_shape = jax.ShapeDtypeStruct((1, 128), jnp.float32)
        out_specs = vmem()

    flops = int(2 * (2 * B) * D * (2 * H)              # merged layer-1 matmul
                + 2 * (2 * B) * (2 * H) * (2 * P)      # merged (block-diagonal) layer-2
                + 2 * B * score_cols * P)              # score matmul
    transcendentals = int(B * B + 3 * B)               # exp pass + row corrections + rsqrt
    bytes_accessed = int(4 * (2 * B * D)                                   # f32 embeddings
                         + 2 * (D * 2 * H + 2 * H * 2 * P)                 # bf16 weights
                         + 4 * (2 * H + 2 * P)                             # f32 biases
                         + 4 * (128 + (B * score_cols if return_scores else 0)))
    cost = pl.CostEstimate(flops=flops, transcendentals=transcendentals,
                           bytes_accessed=bytes_accessed)

    fn = pl.pallas_call(
        functools.partial(_contrastive_kernel, return_scores, score_cols),
        out_shape=out_shape,
        in_specs=[smem(), vmem(), vmem(), vmem(), vmem(), vmem(), vmem()],
        out_specs=out_specs,
        cost_estimate=cost,
        compiler_params=pltpu.CompilerParams(vmem_limit_bytes=32 * 1024 * 1024),
    )
    outs = fn(temp, video_emb, audio_emb, w1, b1, w2, b2)

    if return_scores:
        scal, sva = outs
    else:
        scal = outs

    total_loss = scal[0, 0]
    lv2a = scal[0, 1]
    la2v = scal[0, 2]
    pos = scal[0, 3]
    neg = scal[0, 4]

    metrics = {
        "Scores/V2A/Pos": pos,
        "Scores/V2A/Neg": neg,
        "Loss/V2A": lv2a,
        "Scores/A2V/Pos": pos,
        "Scores/A2V/Neg": neg,
        "Loss/A2V": la2v,
    }

    if return_scores:
        # Only the V2A view is materialized; A2V is its exact transpose (caller can transpose
        # if actually needed) — avoids a full extra B^2 HBM round-trip in the wrapper.
        scores = {"V2A": sva[:, :B]}
        return total_loss, metrics, scores
    return total_loss, metrics


def _init_linear(key, in_dim, out_dim):
    # Deterministic PyTorch-style init: U(-1/sqrt(in), 1/sqrt(in)); weight stored (in, out).
    kw, kb = jax.random.split(key)
    bound = 1.0 / (in_dim ** 0.5)
    w = jax.random.uniform(kw, (in_dim, out_dim), jnp.float32, -bound, bound)
    b = jax.random.uniform(kb, (1, out_dim), jnp.float32, -bound, bound)
    # Weights stored bf16 (halves weight DMA + removes per-call casts); biases stay f32.
    return w.astype(jnp.bfloat16), b


def init_head(key, input_dim, proj_dims):
    k1, k2 = jax.random.split(key)
    w1, b1 = _init_linear(k1, input_dim, proj_dims[0])
    w2, b2 = _init_linear(k2, proj_dims[0], proj_dims[1])
    return (w1, b1, w2, b2)


if __name__ == "__main__":
    key = jax.random.PRNGKey(0)
    k_v, k_a, k_vh, k_ah = jax.random.split(key, 4)

    B, INPUT_DIM = 8, 32
    PROJ_DIMS = [24, 16]          # Head = Linear(32, 24) -> ReLU -> Linear(24, 16)
    TEMPERATURE = 0.07

    video_emb = jax.random.normal(k_v, (B, INPUT_DIM), jnp.float32)
    audio_emb = jax.random.normal(k_a, (B, INPUT_DIM), jnp.float32)

    params = {
        "video": init_head(k_vh, INPUT_DIM, PROJ_DIMS),
        "audio": init_head(k_ah, INPUT_DIM, PROJ_DIMS),
    }

    # Default path matches the PyTorch module's forward: (total_loss, metrics) only,
    # no (B,B) score writeback and no wrapper transpose.
    total_loss, metrics = contrastive_loss_forward(
        video_emb, audio_emb, params, temperature=TEMPERATURE)

    jax.block_until_ready(total_loss)
    jax.block_until_ready(metrics["Loss/V2A"])
    jax.block_until_ready(metrics["Scores/A2V/Neg"])
    print("KERNEL_OK")
</pallas_src>

<mosaic_0001>
module attributes {stable_mosaic.version = 11 : i64} {
  func.func @_contrastive_kernel(%arg0: memref<1x1xf32, #tpu.memory_space<smem>>, %arg1: memref<8x32xf32, #tpu.memory_space<vmem>>, %arg2: memref<8x32xf32, #tpu.memory_space<vmem>>, %arg3: memref<32x48xbf16, #tpu.memory_space<vmem>>, %arg4: memref<1x48xf32, #tpu.memory_space<vmem>>, %arg5: memref<48x32xbf16, #tpu.memory_space<vmem>>, %arg6: memref<1x32xf32, #tpu.memory_space<vmem>>, %arg7: memref<1x128xf32, #tpu.memory_space<vmem>>) attributes {dimension_semantics = [], scalar_prefetch = 0 : i64, scratch_operands = 0 : i64, tpu.core_type = #tpu.core_type<tc>} {
    %c0 = arith.constant 0 : index
    %c0_0 = arith.constant 0 : index
    %0 = vector.load %arg1[%c0, %c0_0] : memref<8x32xf32, #tpu.memory_space<vmem>>, vector<8x32xf32>
    %c0_1 = arith.constant 0 : index
    %c0_2 = arith.constant 0 : index
    %1 = vector.load %arg2[%c0_1, %c0_2] : memref<8x32xf32, #tpu.memory_space<vmem>>, vector<8x32xf32>
    %2 = tpu.concatenate %0, %1 in 0 : vector<8x32xf32>, vector<8x32xf32> -> vector<16x32xf32>
    %3 = arith.truncf %2 : vector<16x32xf32> to vector<16x32xbf16>
    %c0_3 = arith.constant 0 : index
    %c0_4 = arith.constant 0 : index
    %4 = vector.load %arg3[%c0_3, %c0_4] : memref<32x48xbf16, #tpu.memory_space<vmem>>, vector<32x48xbf16>
    %cst = arith.constant dense<0.000000e+00> : vector<16x48xf32>
    %5 = tpu.matmul %3, %4, %cst {dimension_numbers = #tpu.dot_dimension_numbers<[1], [0], [0], [1], [0, 0, 1, 1], [], []>} : vector<16x32xbf16>, vector<32x48xbf16>, vector<16x48xf32> -> vector<16x48xf32>
    %c0_5 = arith.constant 0 : index
    %c0_6 = arith.constant 0 : index
    %6 = vector.load %arg4[%c0_5, %c0_6] : memref<1x48xf32, #tpu.memory_space<vmem>>, vector<1x48xf32>
    %7 = vector.broadcast %6 : vector<1x48xf32> to vector<16x48xf32>
    %8 = arith.addf %5, %7 : vector<16x48xf32>
    %cst_7 = arith.constant 0.000000e+00 : f32
    %9 = vector.broadcast %cst_7 : f32 to vector<16x48xf32>
    %10 = arith.maximumf %8, %9 : vector<16x48xf32>
    %11 = arith.truncf %10 : vector<16x48xf32> to vector<16x48xbf16>
    %c0_8 = arith.constant 0 : index
    %c0_9 = arith.constant 0 : index
    %12 = vector.load %arg5[%c0_8, %c0_9] : memref<48x32xbf16, #tpu.memory_space<vmem>>, vector<48x32xbf16>
    %cst_10 = arith.constant dense<0.000000e+00> : vector<16x32xf32>
    %13 = tpu.matmul %11, %12, %cst_10 {dimension_numbers = #tpu.dot_dimension_numbers<[1], [0], [0], [1], [0, 0, 1, 1], [], []>} : vector<16x48xbf16>, vector<48x32xbf16>, vector<16x32xf32> -> vector<16x32xf32>
    %c0_11 = arith.constant 0 : index
    %c0_12 = arith.constant 0 : index
    %14 = vector.load %arg6[%c0_11, %c0_12] : memref<1x32xf32, #tpu.memory_space<vmem>>, vector<1x32xf32>
    %15 = vector.broadcast %14 : vector<1x32xf32> to vector<16x32xf32>
    %16 = arith.addf %13, %15 : vector<16x32xf32>
    %17 = vector.extract_strided_slice %16 {offsets = [0, 0], sizes = [8, 16], strides = [1, 1]} : vector<16x32xf32> to vector<8x16xf32>
    %18 = vector.extract_strided_slice %16 {offsets = [8, 16], sizes = [8, 16], strides = [1, 1]} : vector<16x32xf32> to vector<8x16xf32>
    %19 = arith.mulf %17, %17 : vector<8x16xf32>
    %cst_13 = arith.constant dense<0.000000e+00> : vector<8xf32>
    %20 = vector.multi_reduction <add>, %19, %cst_13 [1] : vector<8x16xf32> to vector<8xf32>
    %21 = vector.shape_cast %20 : vector<8xf32> to vector<8x1xf32>
    %cst_14 = arith.constant 1.000000e-24 : f32
    %22 = vector.broadcast %cst_14 : f32 to vector<8x1xf32>
    %23 = arith.maximumf %21, %22 : vector<8x1xf32>
    %24 = math.rsqrt %23 : vector<8x1xf32>
    %25 = vector.broadcast %24 : vector<8x1xf32> to vector<8x16xf32>
    %26 = arith.mulf %17, %25 : vector<8x16xf32>
    %27 = arith.mulf %18, %18 : vector<8x16xf32>
    %cst_15 = arith.constant dense<0.000000e+00> : vector<8xf32>
    %28 = vector.multi_reduction <add>, %27, %cst_15 [1] : vector<8x16xf32> to vector<8xf32>
    %29 = vector.shape_cast %28 : vector<8xf32> to vector<8x1xf32>
    %cst_16 = arith.constant 1.000000e-24 : f32
    %30 = vector.broadcast %cst_16 : f32 to vector<8x1xf32>
    %31 = arith.maximumf %29, %30 : vector<8x1xf32>
    %32 = math.rsqrt %31 : vector<8x1xf32>
    %33 = vector.broadcast %32 : vector<8x1xf32> to vector<8x16xf32>
    %34 = arith.mulf %18, %33 : vector<8x16xf32>
    %c0_17 = arith.constant 0 : index
    %c0_18 = arith.constant 0 : index
    %35 = memref.load %arg0[%c0_17, %c0_18] : memref<1x1xf32, #tpu.memory_space<smem>>
    %cst_19 = arith.constant 1.000000e+00 : f32
    %36 = arith.divf %cst_19, %35 : f32
    %37 = vector.broadcast %36 : f32 to vector<8x16xf32>
    %38 = arith.mulf %26, %37 : vector<8x16xf32>
    %39 = arith.mulf %38, %34 : vector<8x16xf32>
    %cst_20 = arith.constant dense<0.000000e+00> : vector<8xf32>
    %40 = vector.multi_reduction <add>, %39, %cst_20 [1] : vector<8x16xf32> to vector<8xf32>
    %41 = vector.shape_cast %40 : vector<8xf32> to vector<8x1xf32>
    %cst_21 = arith.constant dense<0.000000e+00> : vector<8x8xf32>
    %42 = tpu.matmul %38, %34, %cst_21 {dimension_numbers = #tpu.dot_dimension_numbers<[1], [1], [0], [0], [0, 0, 1, 0], [], []>} : vector<8x16xf32>, vector<8x16xf32>, vector<8x8xf32> -> vector<8x8xf32>
    %cst_22 = arith.constant dense<0xFF800000> : vector<8xf32>
    %43 = vector.multi_reduction <maximumf>, %42, %cst_22 [1] : vector<8x8xf32> to vector<8xf32>
    %44 = vector.shape_cast %43 : vector<8xf32> to vector<8x1xf32>
    %45 = vector.broadcast %44 : vector<8x1xf32> to vector<8x8xf32>
    %46 = arith.subf %42, %45 : vector<8x8xf32>
    %47 = math.exp %46 : vector<8x8xf32>
    %cst_23 = arith.constant dense<0.000000e+00> : vector<8xf32>
    %48 = vector.multi_reduction <add>, %47, %cst_23 [1] : vector<8x8xf32> to vector<8xf32>
    %49 = vector.shape_cast %48 : vector<8xf32> to vector<8x1xf32>
    %50 = math.log %49 : vector<8x1xf32>
    %51 = arith.addf %50, %44 : vector<8x1xf32>
    %52 = vector.shape_cast %44 : vector<8x1xf32> to vector<1x8x1xf32>
    %cst_24 = arith.constant dense<0xFF800000> : vector<1xf32>
    %53 = vector.multi_reduction <maximumf>, %52, %cst_24 [1, 2] : vector<1x8x1xf32> to vector<1xf32>
    %54 = vector.shape_cast %53 : vector<1xf32> to vector<1x1x1xf32>
    %55 = vector.extract %54[0, 0, 0] : f32 from vector<1x1x1xf32>
    %56 = vector.broadcast %55 : f32 to vector<8x1xf32>
    %57 = arith.subf %44, %56 : vector<8x1xf32>
    %58 = math.exp %57 : vector<8x1xf32>
    %59 = vector.broadcast %58 : vector<8x1xf32> to vector<8x8xf32>
    %60 = arith.mulf %47, %59 : vector<8x8xf32>
    %cst_25 = arith.constant dense<0.000000e+00> : vector<8xf32>
    %61 = vector.multi_reduction <add>, %60, %cst_25 [0] : vector<8x8xf32> to vector<8xf32>
    %62 = vector.shape_cast %61 : vector<8xf32> to vector<1x8xf32>
    %63 = math.log %62 : vector<1x8xf32>
    %64 = vector.broadcast %55 : f32 to vector<1x8xf32>
    %65 = arith.addf %63, %64 : vector<1x8xf32>
    %66 = vector.shape_cast %41 : vector<8x1xf32> to vector<1x8x1xf32>
    %cst_26 = arith.constant dense<0.000000e+00> : vector<1xf32>
    %67 = vector.multi_reduction <add>, %66, %cst_26 [1, 2] : vector<1x8x1xf32> to vector<1xf32>
    %68 = vector.shape_cast %67 : vector<1xf32> to vector<1x1x1xf32>
    %69 = vector.extract %68[0, 0, 0] : f32 from vector<1x1x1xf32>
    %cst_27 = arith.constant 8.000000e+00 : f32
    %70 = arith.divf %69, %cst_27 : f32
    %71 = vector.shape_cast %51 : vector<8x1xf32> to vector<1x8x1xf32>
    %cst_28 = arith.constant dense<0.000000e+00> : vector<1xf32>
    %72 = vector.multi_reduction <add>, %71, %cst_28 [1, 2] : vector<1x8x1xf32> to vector<1xf32>
    %73 = vector.shape_cast %72 : vector<1xf32> to vector<1x1x1xf32>
    %74 = vector.extract %73[0, 0, 0] : f32 from vector<1x1x1xf32>
    %cst_29 = arith.constant 8.000000e+00 : f32
    %75 = arith.divf %74, %cst_29 : f32
    %76 = arith.subf %75, %70 : f32
    %77 = vector.shape_cast %65 : vector<1x8xf32> to vector<1x1x8xf32>
    %cst_30 = arith.constant dense<0.000000e+00> : vector<1xf32>
    %78 = vector.multi_reduction <add>, %77, %cst_30 [1, 2] : vector<1x1x8xf32> to vector<1xf32>
    %79 = vector.shape_cast %78 : vector<1xf32> to vector<1x1x1xf32>
    %80 = vector.extract %79[0, 0, 0] : f32 from vector<1x1x1xf32>
    %cst_31 = arith.constant 8.000000e+00 : f32
    %81 = arith.divf %80, %cst_31 : f32
    %82 = arith.subf %81, %70 : f32
    %83 = arith.addf %76, %82 : f32
    %cst_32 = arith.constant 5.000000e-01 : f32
    %84 = arith.mulf %cst_32, %83 : f32
    %85 = vector.shape_cast %42 : vector<8x8xf32> to vector<1x8x8xf32>
    %cst_33 = arith.constant dense<0.000000e+00> : vector<1xf32>
    %86 = vector.multi_reduction <add>, %85, %cst_33 [1, 2] : vector<1x8x8xf32> to vector<1xf32>
    %87 = vector.shape_cast %86 : vector<1xf32> to vector<1x1x1xf32>
    %88 = vector.extract %87[0, 0, 0] : f32 from vector<1x1x1xf32>
    %89 = vector.shape_cast %41 : vector<8x1xf32> to vector<1x8x1xf32>
    %cst_34 = arith.constant dense<0.000000e+00> : vector<1xf32>
    %90 = vector.multi_reduction <add>, %89, %cst_34 [1, 2] : vector<1x8x1xf32> to vector<1xf32>
    %91 = vector.shape_cast %90 : vector<1xf32> to vector<1x1x1xf32>
    %92 = vector.extract %91[0, 0, 0] : f32 from vector<1x1x1xf32>
    %93 = arith.subf %88, %92 : f32
    %cst_35 = arith.constant 0.0178571437 : f32
    %94 = arith.mulf %93, %cst_35 : f32
    %95 = tpu.iota {dimensions = array<i32: 1>} : vector<1x128xi32>
    %c0_i32 = arith.constant 0 : i32
    %96 = vector.broadcast %c0_i32 : i32 to vector<1x128xi32>
    %97 = arith.cmpi eq, %95, %96 : vector<1x128xi32>
    %c1_i32 = arith.constant 1 : i32
    %98 = vector.broadcast %c1_i32 : i32 to vector<1x128xi32>
    %99 = arith.cmpi eq, %95, %98 : vector<1x128xi32>
    %c2_i32 = arith.constant 2 : i32
    %100 = vector.broadcast %c2_i32 : i32 to vector<1x128xi32>
    %101 = arith.cmpi eq, %95, %100 : vector<1x128xi32>
    %c3_i32 = arith.constant 3 : i32
    %102 = vector.broadcast %c3_i32 : i32 to vector<1x128xi32>
    %103 = arith.cmpi eq, %95, %102 : vector<1x128xi32>
    %c4_i32 = arith.constant 4 : i32
    %104 = vector.broadcast %c4_i32 : i32 to vector<1x128xi32>
    %105 = arith.cmpi eq, %95, %104 : vector<1x128xi32>
    %cst_36 = arith.constant 0.000000e+00 : f32
    %106 = vector.broadcast %94 : f32 to vector<1x128xf32>
    %107 = vector.broadcast %cst_36 : f32 to vector<1x128xf32>
    %108 = arith.select %105, %106, %107 : vector<1x128xi1>, vector<1x128xf32>
    %109 = vector.broadcast %70 : f32 to vector<1x128xf32>
    %110 = arith.select %103, %109, %108 : vector<1x128xi1>, vector<1x128xf32>
    %111 = vector.broadcast %82 : f32 to vector<1x128xf32>
    %112 = arith.select %101, %111, %110 : vector<1x128xi1>, vector<1x128xf32>
    %113 = vector.broadcast %76 : f32 to vector<1x128xf32>
    %114 = arith.select %99, %113, %112 : vector<1x128xi1>, vector<1x128xf32>
    %115 = vector.broadcast %84 : f32 to vector<1x128xf32>
    %116 = arith.select %97, %115, %114 : vector<1x128xi1>, vector<1x128xf32>
    %c0_37 = arith.constant 0 : index
    %c0_38 = arith.constant 0 : index
    %117 = vector.load %arg7[%c0_37, %c0_38] : memref<1x128xf32, #tpu.memory_space<vmem>>, vector<1x128xf32>
    tpu.vector_store %arg7[%c0_37, %c0_38], %116 {strides = array<i32>} : memref<1x128xf32, #tpu.memory_space<vmem>>, vector<1x128xf32>,
    return
  }
}

</mosaic_0001>

<bundles_post_ra>
// kernel: tpu_custom_call.1
= control target key start
LH: loop header
LB: loop body
LE: loop exit
PB: predicated region body
PF: predicated region fallthrough
CT: control target
= control target key end

     0   :  { %v513_v1 = vmov 0.0   ;;  %vm514_vm0 = vmmov 0   ;;  %s608_s0 = inlined_call_operand.<no memory space> [shape: f32[1,1], index: 0, kind: input, shape index: {}]   ;;  %s609_s1 = inlined_call_operand.vmem [shape: f32[8,32], index: 1, kind: input, shape index: {}]   ;;  %s610_s2 = inlined_call_operand.vmem [shape: f32[8,32], index: 2, kind: input, shape index: {}]   ;;  %s611_s3 = inlined_call_operand.vmem [shape: bf16[32,48], index: 3, kind: input, shape index: {}]   ;;  %s612_s4 = inlined_call_operand.vmem [shape: f32[1,48], index: 4, kind: input, shape index: {}]   ;;  %s613_s5 = inlined_call_operand.vmem [shape: bf16[48,32], index: 5, kind: input, shape index: {}]   ;;  %s614_s6 = inlined_call_operand.vmem [shape: f32[1,32], index: 6, kind: input, shape index: {}]   ;;  %s615_s7 = inlined_call_operand.hbm [shape: f32[1,128], index: 7, kind: output, shape index: {}]  }
   0x1   :  { %v470_v0 = vld [vmem:[%s611_s3] sm:$0xff]   ;;  %431 = vmatprep.subr.bf16.mxu0 %v513_v1  ;;  %v471_v2 = vld [vmem:[%s611_s3 + $0x8] sm:$0xff]   ;;  %439 = vmatprep.subr.bf16.mxu1 %v513_v1 }
   0x2   :  { %432 = vmatpush3.bf16.msra.mxu0 %v470_v0  ;;  %435 = vmatprep.mubr.msk.bf16.mxu0 %vm514_vm0, %v513_v1  ;;  %v29_v3 = vld [vmem:[%s609_s1] sm:$0xff] }
   0x3   :  { %v30_v4 = vld [vmem:[%s610_s2] sm:$0xff]  ;;  %433 = vmatprep.subr.bf16.mxu0 %v513_v1  ;;  %445 = vmatprep.mubr.msk.bf16.mxu1 %vm514_vm0, %v513_v1 }
   0x4   :  { %v472_v5 = vld [vmem:[%s613_s5] sm:$0xff]   ;;  %v31_v6 = vpack.c.bf16 %v30_v4, %v29_v3 }
   0x5   :  { %440 = vmatpush3.bf16.msra.mxu1 %v472_v5 }
   0x6   :  { %13 = vsyncpa [#allocation4], 0  ;;  %434 = vmatpush3.bf16.msra.mxu0 %v471_v2  ;;  %vm55_vm1 = vcmask 261120   ;;  %441 = vmatprep.subr.bf16.mxu1 %v513_v1  ;;  %v473_v7 = vld [vmem:[%s613_s5 + $0x8] sm:$0xff]   ;;  %v474_v8 = vld [vmem:[%s613_s5 + $0x10] sm:$0xff]   ;;  %vm134_vm2 = vcmask 392192   ;;  %v199_v19 = vstv %s608_s0 }
   0x7   :  { %449 = vmatprep.subr.mxu0 %v513_v1  ;;  %v411_v9 = vld [vmem:[%s612_s4] ss:$0 sm:$0xff]  ;;  %475 = vrcp.f32 %v199_v19  ;;  %vm180_vm3 = vcmask 130048   ;;  %s515_s0 = smov 112   ;;  %vm287_vm4 = vcmask 64512   ;;  %vm322_vm5 = vcmask 7168  }
   0x8   :  { %v415_v21 = vld [vmem:[%s614_s6] ss:$0 sm:$0xff]  ;;  %vm350_vm6 = vcmask 57344   ;;  %s516_s30 = smov [#allocation3]  }
   0x9   :  { %436 = vmatmul.mubr.msk.bf16.vlgmr.msra.gmra.mrb[0].mxu0 %vm55_vm1, %v31_v6  ;;  %442 = vmatpush3.bf16.msra.mxu1 %v473_v7  ;;  %s403_s8 = sshll.u32 %s516_s30, 4  ;;  %s404_s8 = int_to_ptr.vmem [resolvable:$true] %s403_s8 }
   0xa   :  { %451 = vmatprep.mubr.msk.f32.mxu0 %vm514_vm0, %v513_v1  ;;  %443 = vmatprep.subr.bf16.mxu1 %v513_v1  ;;  %s489_s9 = scalar_lea.vmem %s404_s8, 16  ;;  %s493_s10 = scalar_lea.vmem %s404_s8, 32 }
   0xb   :  { %p490_p0 = scmp.ne.s32.totalorder %s404_s8, %s489_s9  ;;  %p494_p1 = scmp.lt.s32.totalorder %s404_s8, %s404_s8 }
   0xc   :  { %p495_p2 = scmp.lt.s32.totalorder %s493_s10, %s489_s9 }
   0xd   :  { %444 = vmatpush3.bf16.msra.mxu1 %v474_v8 }
   0xe   :  { %p496_p3 = por %p495_p2, %p494_p1 }
  0x10   :  { %p497_p4 = pnand %p496_p3, %p490_p0 }
  0x11   :  { %v476_v20 = vpop.eup %475 }
  0x12   :  { %454 = vpush %v476_v20 }
  0x43   :  { %s455_s6 = spop %454 }
  0x44   :  { %v202_v41 = vstv %s455_s6 }
  0xdc   :  { %v93_v10 = vpop.f32.mrb[0].mxu0 }
  0xdd   :  { %v94_v11 = vadd.f32 %v411_v9, %v93_v10  ;;  %v437_v12 = vpop.f32.mrb[1].mxu0 }
  0xde   :  { %v96_v13 = vpop.f32.mrb[2].mxu0 }
  0xdf   :  { %v97_v14 = vadd.f32 %v411_v9, %v96_v13  ;;  %v438_v15 = vpop.f32.mrb[3].mxu0  ;;  %v100_v16 = vmax.f32 %v94_v11, 0.0 }
  0xe1   :  { %v101_v17 = vmax.f32 %v97_v14, 0.0 }
  0xe3   :  { %v102_v18 = vpack.c.bf16 %v101_v17, %v100_v16 }
  0xe5   :  { %446 = vmatmul.mubr.msk.bf16.vlgmr.msra.gmra.mrb[0].mxu1 %vm134_vm2, %v102_v18 }
 0x1b8   :  { %v172_v22 = vpop.f32.mrb[0].mxu1 }
 0x1b9   :  { %v173_v23 = vadd.f32 %v415_v21, %v172_v22  ;;  %v447_v24 = vpop.f32.mrb[1].mxu1 }
 0x1ba   :  { %v175_v25 = vpop.f32.mrb[2].mxu1 }
 0x1bb   :  { %v176_v26 = vadd.f32 %v415_v21, %v175_v25  ;;  %v448_v27 = vpop.f32.mrb[3].mxu1  ;;  %v179_v28 = vmul.f32 %v173_v23, %v173_v23 }
 0x1bd   :  { %v181_v29 = vsel %vm180_vm3, %v179_v28, 0.0  ;;  %v187_v30 = vmul.f32 %v176_v26, %v176_v26 }
 0x1be   :  { %182 = vadd.xlane.f32.xlu1 %v181_v29 }
 0x1bf   :  { %189 = vrot.lane.b32.xlu0 %v187_v30, %s515_s0 }
 0x231   :  { %v190_v31 = vpop.permute.xlu0 %189 }
 0x232   :  { %v192_v32 = vsel %vm180_vm3, %v190_v31, 0.0 }
 0x233   :  { %193 = vadd.xlane.f32.xlu0 %v192_v32 }
 0x24b   :  { %v183_v37 = vpop.xlane.xlu1 %182 }
 0x24c   :  { %v184_v38 = vmax.f32 %v183_v37, 1e-24 }
 0x2c0   :  { %v194_v33 = vpop.xlane.xlu0 %193 }
 0x2c1   :  { %v195_v34 = vmax.f32 %v194_v33, 1e-24 }
 0x2c3   :  { %477 = vrsqrt.f32 %v195_v34 }
 0x2c4   :  { %479 = vrsqrt.f32 %v184_v38 }
 0x2cd   :  { %v478_v35 = vpop.eup %477 }
 0x2ce   :  { %v197_v36 = vmul.f32 %v478_v35, %v176_v26  ;;  %v480_v39 = vpop.eup %479 }
 0x2cf   :  { %v186_v40 = vmul.f32 %v480_v39, %v173_v23 }
 0x2d0   :  { %205 = vrot.lane.b32.xlu1 %v197_v36, %s515_s0 }
 0x2d1   :  { %v203_v43 = vmul.f32 %v202_v41, %v186_v40 }
 0x342   :  { %v206_v42 = vpop.permute.xlu1 %205 }
 0x343   :  { %450 = vmatpush3.xpose.msk.msra.mxu0 %vm180_vm3, %v206_v42  ;;  %v208_v57 = vmul.f32 %v206_v42, %v203_v43 }
 0x345   :  { %v209_v59 = vsel %vm180_vm3, %v208_v57, 0.0 }
 0x346   :  { %452 = vmatmul.mubr.msk.f32.vlgmr.msra.gmra.mrb[4].mxu0 %vm180_vm3, %v203_v43 }
 0x419   :  { %v283_v44 = vpop.f32.mrb[4].mxu0 }
 0x41a   :  { %v453_v45 = vpop.f32.mrb[5].mxu0  ;;  %v288_v46 = vsel %vm287_vm4, %v283_v44, -inf  ;;  %v367_v19 = vsel %vm287_vm4, %v283_v44, 0.0 }
 0x41b   :  { %289 = vmax.xlane.f32.xlu1 %v288_v46 }
 0x4a8   :  { %v290_v47 = vpop.xlane.xlu1 %289 }
 0x4a9   :  { %v291_v48 = vsub.f32 %v283_v44, %v290_v47  ;;  %v300_v49 = vrot.slane %v290_v47, 4 }
 0x4ab   :  { %v292_v50 = vmul.f32 1.442695, %v291_v48  ;;  %v301_v51 = vmax.f32 %v290_v47, %v300_v49  ;;  %v379_v48 = vlaneseq }
 0x4ad   :  { %481 = vpow2.f32 %v292_v50  ;;  %v302_v52 = vrot.slane %v301_v51, 2  ;;  %v380_v49 = vand.u32 127, %v379_v48 }
 0x4af   :  { %v303_v53 = vmax.f32 %v301_v51, %v302_v52  ;;  %vm385_vm7 = vcmp.eq.s32.totalorder %v380_v49, 4  ;;  %vm384_vm8 = vcmp.eq.s32.totalorder %v380_v49, 3  ;;  %vm383_vm9 = vcmp.eq.s32.totalorder %v380_v49, 2 }
 0x4b0   :  { %vm382_vm10 = vcmp.eq.s32.totalorder %v380_v49, 1  ;;  %vm381_vm11 = vcmp.eq.s32.totalorder %v380_v49, 0 }
 0x4b1   :  { %v304_v54 = vrot.slane %v303_v53, 1 }
 0x4b3   :  { %v305_v55 = vmax.f32 %v303_v53, %v304_v54 }
 0x4b5   :  { %456 = vpush %v305_v55 }
 0x4b7   :  { %v482_v56 = vpop.eup %481 }
 0x4b8   :  { %v294_v58 = vsel %vm287_vm4, %v482_v56, 0.0 }
 0x4b9   :  { %295 = vadd.xlane.f32.xlu0 %v294_v58 }
 0x4bd   :  { %210 = vadd.xlane.f32.xlu0 %v209_v59 }
 0x4e6   :  { %s457_s16 = spop %456 }
 0x4e7   :  { %v307_v60 = vstv %s457_s16 }
 0x4e8   :  { %v308_v61 = vsub.f32 %v290_v47, %v307_v60 }
 0x4ea   :  { %v309_v62 = vmul.f32 1.442695, %v308_v61 }
 0x4ec   :  { %483 = vpow2.f32 %v309_v62 }
 0x4f6   :  { %v484_v63 = vpop.eup %483 }
 0x4f7   :  { %v311_v0 = vmul.f32 %v484_v63, %v482_v56 }
 0x4f9   :  { %v312_v1 = vsel %vm287_vm4, %v311_v0, 0.0 }
 0x4fa   :  { %v313_v2 = vrot.slane %v312_v1, 4 }
 0x4fc   :  { %v314_v3 = vadd.f32 %v313_v2, %v312_v1 }
 0x4fe   :  { %v315_v4 = vrot.slane %v314_v3, 2 }
 0x500   :  { %v316_v5 = vadd.f32 %v315_v4, %v314_v3 }
 0x502   :  { %v317_v6 = vrot.slane %v316_v5, 1 }
 0x504   :  { %v318_v7 = vadd.f32 %v317_v6, %v316_v5 }
 0x506   :  { %485 = vlog2.f32 %v318_v7 }
 0x510   :  { %v486_v8 = vpop.eup %485 }
 0x511   :  { %v320_v10 = vmul.f32 0.6931472, %v486_v8 }
 0x513   :  { %v321_v12 = vadd.f32 %v320_v10, %v307_v60 }
 0x515   :  { %v351_v14 = vsel %vm350_vm6, %v321_v12, 0.0 }
 0x546   :  { %v296_v9 = vpop.xlane.xlu0 %295 }
 0x547   :  { %487 = vlog2.f32 %v296_v9 }
 0x54a   :  { %v211_v11 = vpop.xlane.xlu0 %210 }
 0x54b   :  { %v323_v13 = vsel %vm322_vm5, %v211_v11, 0.0 }
 0x54c   :  { %324 = vadd.xlane.f32.xlu0 %v323_v13 }
 0x550   :  { %352 = vadd.xlane.f32.xlu0 %v351_v14 }
 0x551   :  { %v488_v15 = vpop.eup %487 }
 0x552   :  { %v298_v16 = vmul.f32 0.6931472, %v488_v15 }
 0x554   :  { %v299_v17 = vadd.f32 %v298_v16, %v290_v47 }
 0x556   :  { %v336_v18 = vsel %vm322_vm5, %v299_v17, 0.0 }
 0x557   :  { %337 = vadd.xlane.f32.xlu0 %v336_v18 }
 0x55b   :  { %368 = vadd.xlane.f32.xlu0 %v367_v19 }
 0x5d9   :  { %v325_v20 = vpop.xlane.xlu0 %324 }
 0x5da   :  { %v326_v21 = vrot.slane %v325_v20, 4 }
 0x5dc   :  { %v327_v22 = vadd.f32 %v326_v21, %v325_v20 }
 0x5dd   :  { %v353_v23 = vpop.xlane.xlu0 %352 }
 0x5de   :  { %v328_v24 = vrot.slane %v327_v22, 2  ;;  %v354_v25 = vrot.slane %v353_v23, 4 }
 0x5e0   :  { %v355_v26 = vadd.f32 %v354_v25, %v353_v23  ;;  %v329_v27 = vadd.f32 %v328_v24, %v327_v22 }
 0x5e2   :  { %v330_v28 = vrot.slane %v329_v27, 1  ;;  %v356_v29 = vrot.slane %v355_v26, 2 }
 0x5e4   :  { %v338_v30 = vpop.xlane.xlu0 %337  ;;  %v331_v31 = vadd.f32 %v330_v28, %v329_v27  ;;  %v357_v35 = vadd.f32 %v356_v29, %v355_v26 }
 0x5e5   :  { %v339_v32 = vrot.slane %v338_v30, 4 }
 0x5e6   :  { %458 = vpush %v331_v31  ;;  %v358_v40 = vrot.slane %v357_v35, 1 }
 0x5e7   :  { %v340_v33 = vadd.f32 %v339_v32, %v338_v30 }
 0x5e8   :  { %v369_v34 = vpop.xlane.xlu0 %368  ;;  %v359_v45 = vadd.f32 %v358_v40, %v357_v35 }
 0x5e9   :  { %v341_v36 = vrot.slane %v340_v33, 2  ;;  %v370_v37 = vrot.slane %v369_v34, 4 }
 0x5eb   :  { %v371_v38 = vadd.f32 %v370_v37, %v369_v34  ;;  %v342_v39 = vadd.f32 %v341_v36, %v340_v33 }
 0x5ed   :  { %v372_v41 = vrot.slane %v371_v38, 2  ;;  %v343_v42 = vrot.slane %v342_v39, 1 }
 0x5ef   :  { %v373_v43 = vadd.f32 %v372_v41, %v371_v38  ;;  %v344_v44 = vadd.f32 %v343_v42, %v342_v39 }
 0x5f1   :  { %460 = vpush %v344_v44  ;;  %v374_v46 = vrot.slane %v373_v43, 1 }
 0x5f2   :  { %462 = vpush %v359_v45 }
 0x5f3   :  { %v375_v47 = vadd.f32 %v374_v46, %v373_v43 }
 0x5f5   :  { %464 = vpush %v375_v47 }
 0x617   :  { %s459_s17 = spop %458 }
 0x618   :  { %s335_s18 = smul.f32 0.125, %s459_s17 }
 0x61a   :  { %v388_v51 = vstv %s335_s18 }
 0x622   :  { %s461_s19 = spop %460 }
 0x623   :  { %s348_s20 = smul.f32 0.125, %s461_s19  ;;  %s463_s21 = spop %462 }
 0x624   :  { %s363_s22 = smul.f32 0.125, %s463_s21 }
 0x625   :  { %s349_s23 = ssub.f32 %s348_s20, %s335_s18 }
 0x626   :  { %s364_s24 = ssub.f32 %s363_s22, %s335_s18  ;;  %s465_s25 = spop %464 }
 0x627   :  { %s377_s26 = ssub.f32 %s465_s25, %s459_s17  ;;  %v392_v55 = vstv %s349_s23 }
 0x628   :  { %s365_s27 = sadd.f32 %s364_s24, %s349_s23  ;;  %v390_v53 = vstv %s364_s24 }
 0x629   :  { %s378_s28 = smul.f32 0.017857144, %s377_s26 }
 0x62a   :  { %s366_s29 = smul.f32 0.5, %s365_s27 }
 0x62b   :  { %v386_v50 = vstv %s378_s28 }
 0x62c   :  { %v387_v52 = vsel %vm385_vm7, %v386_v50, 0.0  ;;  %v394_v58 = vstv %s366_s29 }
 0x62d   :  { %v389_v54 = vsel %vm384_vm8, %v388_v51, %v387_v52 }
 0x62e   :  { %v391_v56 = vsel %vm383_vm9, %v390_v53, %v389_v54 }
 0x62f   :  { %v393_v57 = vsel %vm382_vm10, %v392_v55, %v391_v56 }
 0x630   :  { %v395_v59 = vsel %vm381_vm11, %v394_v58, %v393_v57 }
 0x631   :  { %396 = vst [vmem:[#allocation3] sm:$0x1] %v395_v59 }
 0x632   :  { %500 = shalt.err (!%p497_p4)
}
 0x633   :  { %s501_s2 = scalar_lea.hbm %s615_s7, 16 }
 0x634   :  { %p502_p5 = scmp.ne.s32.totalorder %s615_s7, %s501_s2  ;;  %p505_p6 = scmp.lt.u32.totalorder %s501_s2, %s615_s7 }
 0x636   :  { %p507_p7 = pnand %p505_p6, %p502_p5 }
 0x638   :  { %510 = shalt.err (!%p507_p7)
}
 0x639   :  { %406 = dma.vmem_to_hbm [thread:$0]  %s404_s8, 16, %s615_s7, [#allocation4]  }
 0x63a   :  { %511 = dma.done.wait [#allocation4], 16  }
 0x63b   :  { %512 = vsyncadd [#allocation4], 4294967280 }
 0x63c   :  { %410 = vsyncpa [#allocation4], 1 }

</bundles_post_ra>
